<compile_context>
chip_gen: v7x
topology: tpu7x:2x2x1
jax: 0.10.0
libtpu: 0.0.40
codegen_flags: <defaults>
</compile_context>

<pallas_src>
import functools

import jax
import jax.numpy as jnp
from jax.experimental import pallas as pl
from jax.experimental.pallas import tpu as pltpu


def _lstm_fc_kernel(x_ref, w_ih_t_ref, w_hh_t_ref, b_ref, w_fc_t_ref,
                    b_fc_ref, out_ref, *, seq_len, hidden_size, batch_pad):
    T = seq_len
    H = hidden_size
    Bp = batch_pad

    # Hoisted, time-parallel input projection with both LSTM biases folded in:
    #   (T*Bp, I) @ (I, 4H) + (b_ih + b_hh)  ->  (T*Bp, 4H)
    gates_x = (jnp.dot(x_ref[...], w_ih_t_ref[...],
                       preferred_element_type=jnp.float32)
               + b_ref[...])

    w_hh_t = w_hh_t_ref[...]                      # (H, 4H), resident in vregs

    h = jnp.zeros((Bp, H), jnp.float32)
    c = jnp.zeros((Bp, H), jnp.float32)

    # Sequential recurrence. T is small & static -> fully unrolled with static
    # slices; each (Bp, 4H) slab is exactly one aligned (8, 128) tile.
    # Gate order matches PyTorch LSTM: [i, f, g, o].
    for t in range(T):
        gates = (jnp.dot(h, w_hh_t, preferred_element_type=jnp.float32)
                 + gates_x[t * Bp:(t + 1) * Bp, :])
        # Two whole-tile EUP dispatches instead of four (8,32) ones.
        sig = jax.nn.sigmoid(gates)               # (Bp, 4H) full vreg
        th = jnp.tanh(gates)                      # (Bp, 4H) full vreg
        i_g = sig[:, 0 * H:1 * H]
        f_g = sig[:, 1 * H:2 * H]
        g_g = th[:, 2 * H:3 * H]
        o_g = sig[:, 3 * H:4 * H]
        c = f_g * c + i_g * g_g
        h = o_g * jnp.tanh(c)

    # out[:, -1, :] -> dropout (identity in eval) -> fc (lane-dense, padded O)
    out_ref[...] = (jnp.dot(h, w_fc_t_ref[...],
                            preferred_element_type=jnp.float32)
                    + b_fc_ref[...])


def prepare_params(params):
    """One-time prep: transposes, bias fold, casts, lane-padding of fc."""
    w_ih, w_hh, b_ih, b_hh, w_fc, b_fc = params
    H = w_hh.shape[1]
    O = w_fc.shape[0]
    Opad = max(128, ((O + 127) // 128) * 128)     # lane-dense output width

    w_ih_t = jnp.transpose(w_ih.astype(jnp.float32))          # (I, 4H)
    w_hh_t = jnp.transpose(w_hh.astype(jnp.float32))          # (H, 4H)
    b_gates = (b_ih + b_hh).astype(jnp.float32).reshape(1, 4 * H)
    w_fc_t = jnp.transpose(w_fc.astype(jnp.float32))          # (H, O)
    w_fc_t = jnp.pad(w_fc_t, ((0, 0), (0, Opad - O)))         # (H, Opad)
    b_fc_p = jnp.pad(b_fc.astype(jnp.float32), (0, Opad - O)).reshape(1, Opad)
    return (w_ih_t, w_hh_t, b_gates, w_fc_t, b_fc_p)


@functools.partial(jax.jit, static_argnames=("output_size",))
def net_forward(x, prepped, *, output_size):
    """x: (B, T, I) batch-first, like the PyTorch module (eval mode)."""
    w_ih_t, w_hh_t, b_gates, w_fc_t, b_fc_p = prepped
    B, T, I = x.shape
    H = w_hh_t.shape[0]
    Opad = w_fc_t.shape[1]
    Bp = max(8, ((B + 7) // 8) * 8)               # pad batch to sublane width

    x = x.astype(jnp.float32)
    x_tm = jnp.transpose(x, (1, 0, 2))                        # (T, B, I)
    x_tm = jnp.pad(x_tm, ((0, 0), (0, Bp - B), (0, 0)))       # (T, Bp, I)
    x_flat = x_tm.reshape(T * Bp, I)                          # (T*Bp, I)

    # Advisory cost estimate for the XLA scheduler.
    flops = (2 * T * Bp * I * 4 * H          # input projection
             + T * 2 * Bp * H * 4 * H        # recurrent matmuls
             + 2 * Bp * H * Opad)            # fc
    transcendentals = T * Bp * (2 * 4 * H + H)
    bytes_accessed = 4 * (x_flat.size + w_ih_t.size + w_hh_t.size
                          + b_gates.size + w_fc_t.size + b_fc_p.size
                          + Bp * Opad)

    kernel = functools.partial(_lstm_fc_kernel, seq_len=T, hidden_size=H,
                               batch_pad=Bp)
    vmem_spec = pl.BlockSpec(memory_space=pltpu.MemorySpace.VMEM)

    # Single gridless invocation: every operand is a whole-array VMEM block.
    out_pad = pl.pallas_call(
        kernel,
        out_shape=jax.ShapeDtypeStruct((Bp, Opad), jnp.float32),
        in_specs=[vmem_spec] * 6,
        out_specs=vmem_spec,
        cost_estimate=pl.CostEstimate(flops=flops,
                                      transcendentals=transcendentals,
                                      bytes_accessed=bytes_accessed),
    )(x_flat, w_ih_t, w_hh_t, b_gates, w_fc_t, b_fc_p)

    return out_pad[:B, :output_size]


def net_forward_ref(x, params):
    """Pure-JAX reference (lax.scan LSTM) for correctness checking."""
    w_ih, w_hh, b_ih, b_hh, w_fc, b_fc = params
    B, T, I = x.shape
    H = w_hh.shape[1]
    x = x.astype(jnp.float32)

    def step(carry, x_t):
        h, c = carry
        gates = x_t @ w_ih.T + h @ w_hh.T + b_ih + b_hh
        i_g = jax.nn.sigmoid(gates[:, 0 * H:1 * H])
        f_g = jax.nn.sigmoid(gates[:, 1 * H:2 * H])
        g_g = jnp.tanh(gates[:, 2 * H:3 * H])
        o_g = jax.nn.sigmoid(gates[:, 3 * H:4 * H])
        c = f_g * c + i_g * g_g
        h = o_g * jnp.tanh(c)
        return (h, c), None

    h0 = jnp.zeros((B, H), jnp.float32)
    c0 = jnp.zeros((B, H), jnp.float32)
    (h, _), _ = jax.lax.scan(step, (h0, c0), jnp.transpose(x, (1, 0, 2)))
    return h @ w_fc.T + b_fc  # dropout is identity in eval


def init_params(key, input_size, hidden_size, output_size):
    ks = jax.random.split(key, 6)
    s = 1.0 / jnp.sqrt(hidden_size)
    w_ih = jax.random.uniform(ks[0], (4 * hidden_size, input_size),
                              jnp.float32, -s, s)
    w_hh = jax.random.uniform(ks[1], (4 * hidden_size, hidden_size),
                              jnp.float32, -s, s)
    b_ih = jax.random.uniform(ks[2], (4 * hidden_size,), jnp.float32, -s, s)
    b_hh = jax.random.uniform(ks[3], (4 * hidden_size,), jnp.float32, -s, s)
    w_fc = jax.random.uniform(ks[4], (output_size, hidden_size),
                              jnp.float32, -s, s)
    b_fc = jax.random.uniform(ks[5], (output_size,), jnp.float32, -s, s)
    return (w_ih, w_hh, b_ih, b_hh, w_fc, b_fc)


if __name__ == "__main__":
    # Net(input_size=9, hidden_size=32, output_size=16), seq len 8, batch 2.
    B, T, I, H, O = 2, 8, 9, 32, 16
    key = jax.random.PRNGKey(0)
    k_x, k_p = jax.random.split(key)
    x = jax.random.normal(k_x, (B, T, I), jnp.float32)
    params = init_params(k_p, I, H, O)

    # TODO(synk): nn.Dropout() is implemented as identity (eval-mode semantics).
    prepped = prepare_params(params)            # one-time param prep
    out = net_forward(x, prepped, output_size=O)
    out = jax.block_until_ready(out)

    ref = jax.block_until_ready(net_forward_ref(x, params))
    assert out.shape == (B, O)
    assert jnp.allclose(out, ref, atol=1e-4, rtol=1e-4)
    print("KERNEL_OK")
</pallas_src>

<mosaic_0001>
module attributes {stable_mosaic.version = 11 : i64} {
  func.func @_lstm_fc_kernel(%arg0: memref<64x9xf32, #tpu.memory_space<vmem>>, %arg1: memref<9x128xf32, #tpu.memory_space<vmem>>, %arg2: memref<32x128xf32, #tpu.memory_space<vmem>>, %arg3: memref<1x128xf32, #tpu.memory_space<vmem>>, %arg4: memref<32x128xf32, #tpu.memory_space<vmem>>, %arg5: memref<1x128xf32, #tpu.memory_space<vmem>>, %arg6: memref<8x128xf32, #tpu.memory_space<vmem>>) attributes {dimension_semantics = [], scalar_prefetch = 0 : i64, scratch_operands = 0 : i64, tpu.core_type = #tpu.core_type<tc>} {
    %c0 = arith.constant 0 : index
    %c0_0 = arith.constant 0 : index
    %0 = vector.load %arg0[%c0, %c0_0] : memref<64x9xf32, #tpu.memory_space<vmem>>, vector<64x9xf32>
    %c0_1 = arith.constant 0 : index
    %c0_2 = arith.constant 0 : index
    %1 = vector.load %arg1[%c0_1, %c0_2] : memref<9x128xf32, #tpu.memory_space<vmem>>, vector<9x128xf32>
    %cst = arith.constant dense<0.000000e+00> : vector<64x128xf32>
    %2 = tpu.matmul %0, %1, %cst {dimension_numbers = #tpu.dot_dimension_numbers<[1], [0], [0], [1], [0, 0, 1, 1], [], []>} : vector<64x9xf32>, vector<9x128xf32>, vector<64x128xf32> -> vector<64x128xf32>
    %c0_3 = arith.constant 0 : index
    %c0_4 = arith.constant 0 : index
    %3 = vector.load %arg3[%c0_3, %c0_4] : memref<1x128xf32, #tpu.memory_space<vmem>>, vector<1x128xf32>
    %4 = vector.broadcast %3 : vector<1x128xf32> to vector<64x128xf32>
    %5 = arith.addf %2, %4 : vector<64x128xf32>
    %c0_5 = arith.constant 0 : index
    %c0_6 = arith.constant 0 : index
    %6 = vector.load %arg2[%c0_5, %c0_6] : memref<32x128xf32, #tpu.memory_space<vmem>>, vector<32x128xf32>
    %cst_7 = arith.constant 0.000000e+00 : f32
    %7 = vector.broadcast %cst_7 : f32 to vector<8x32xf32>
    %cst_8 = arith.constant 0.000000e+00 : f32
    %8 = vector.broadcast %cst_8 : f32 to vector<8x32xf32>
    %cst_9 = arith.constant dense<0.000000e+00> : vector<8x128xf32>
    %9 = tpu.matmul %7, %6, %cst_9 {dimension_numbers = #tpu.dot_dimension_numbers<[1], [0], [0], [1], [0, 0, 1, 1], [], []>} : vector<8x32xf32>, vector<32x128xf32>, vector<8x128xf32> -> vector<8x128xf32>
    %10 = vector.extract_strided_slice %5 {offsets = [0, 0], sizes = [8, 128], strides = [1, 1]} : vector<64x128xf32> to vector<8x128xf32>
    %11 = arith.addf %9, %10 : vector<8x128xf32>
    %12 = arith.negf %11 : vector<8x128xf32>
    %13 = math.exp %12 : vector<8x128xf32>
    %cst_10 = arith.constant 1.000000e+00 : f32
    %14 = vector.broadcast %cst_10 : f32 to vector<8x128xf32>
    %15 = arith.addf %14, %13 : vector<8x128xf32>
    %16 = arith.divf %14, %15 : vector<8x128xf32>
    %17 = math.tanh %11 : vector<8x128xf32>
    %18 = vector.extract_strided_slice %16 {offsets = [0, 0], sizes = [8, 32], strides = [1, 1]} : vector<8x128xf32> to vector<8x32xf32>
    %19 = vector.extract_strided_slice %16 {offsets = [0, 32], sizes = [8, 32], strides = [1, 1]} : vector<8x128xf32> to vector<8x32xf32>
    %20 = vector.extract_strided_slice %17 {offsets = [0, 64], sizes = [8, 32], strides = [1, 1]} : vector<8x128xf32> to vector<8x32xf32>
    %21 = vector.extract_strided_slice %16 {offsets = [0, 96], sizes = [8, 32], strides = [1, 1]} : vector<8x128xf32> to vector<8x32xf32>
    %22 = arith.mulf %19, %8 : vector<8x32xf32>
    %23 = arith.mulf %18, %20 : vector<8x32xf32>
    %24 = arith.addf %22, %23 : vector<8x32xf32>
    %25 = math.tanh %24 : vector<8x32xf32>
    %26 = arith.mulf %21, %25 : vector<8x32xf32>
    %cst_11 = arith.constant dense<0.000000e+00> : vector<8x128xf32>
    %27 = tpu.matmul %26, %6, %cst_11 {dimension_numbers = #tpu.dot_dimension_numbers<[1], [0], [0], [1], [0, 0, 1, 1], [], []>} : vector<8x32xf32>, vector<32x128xf32>, vector<8x128xf32> -> vector<8x128xf32>
    %28 = vector.extract_strided_slice %5 {offsets = [8, 0], sizes = [8, 128], strides = [1, 1]} : vector<64x128xf32> to vector<8x128xf32>
    %29 = arith.addf %27, %28 : vector<8x128xf32>
    %30 = arith.negf %29 : vector<8x128xf32>
    %31 = math.exp %30 : vector<8x128xf32>
    %cst_12 = arith.constant 1.000000e+00 : f32
    %32 = vector.broadcast %cst_12 : f32 to vector<8x128xf32>
    %33 = arith.addf %32, %31 : vector<8x128xf32>
    %34 = arith.divf %32, %33 : vector<8x128xf32>
    %35 = math.tanh %29 : vector<8x128xf32>
    %36 = vector.extract_strided_slice %34 {offsets = [0, 0], sizes = [8, 32], strides = [1, 1]} : vector<8x128xf32> to vector<8x32xf32>
    %37 = vector.extract_strided_slice %34 {offsets = [0, 32], sizes = [8, 32], strides = [1, 1]} : vector<8x128xf32> to vector<8x32xf32>
    %38 = vector.extract_strided_slice %35 {offsets = [0, 64], sizes = [8, 32], strides = [1, 1]} : vector<8x128xf32> to vector<8x32xf32>
    %39 = vector.extract_strided_slice %34 {offsets = [0, 96], sizes = [8, 32], strides = [1, 1]} : vector<8x128xf32> to vector<8x32xf32>
    %40 = arith.mulf %37, %24 : vector<8x32xf32>
    %41 = arith.mulf %36, %38 : vector<8x32xf32>
    %42 = arith.addf %40, %41 : vector<8x32xf32>
    %43 = math.tanh %42 : vector<8x32xf32>
    %44 = arith.mulf %39, %43 : vector<8x32xf32>
    %cst_13 = arith.constant dense<0.000000e+00> : vector<8x128xf32>
    %45 = tpu.matmul %44, %6, %cst_13 {dimension_numbers = #tpu.dot_dimension_numbers<[1], [0], [0], [1], [0, 0, 1, 1], [], []>} : vector<8x32xf32>, vector<32x128xf32>, vector<8x128xf32> -> vector<8x128xf32>
    %46 = vector.extract_strided_slice %5 {offsets = [16, 0], sizes = [8, 128], strides = [1, 1]} : vector<64x128xf32> to vector<8x128xf32>
    %47 = arith.addf %45, %46 : vector<8x128xf32>
    %48 = arith.negf %47 : vector<8x128xf32>
    %49 = math.exp %48 : vector<8x128xf32>
    %cst_14 = arith.constant 1.000000e+00 : f32
    %50 = vector.broadcast %cst_14 : f32 to vector<8x128xf32>
    %51 = arith.addf %50, %49 : vector<8x128xf32>
    %52 = arith.divf %50, %51 : vector<8x128xf32>
    %53 = math.tanh %47 : vector<8x128xf32>
    %54 = vector.extract_strided_slice %52 {offsets = [0, 0], sizes = [8, 32], strides = [1, 1]} : vector<8x128xf32> to vector<8x32xf32>
    %55 = vector.extract_strided_slice %52 {offsets = [0, 32], sizes = [8, 32], strides = [1, 1]} : vector<8x128xf32> to vector<8x32xf32>
    %56 = vector.extract_strided_slice %53 {offsets = [0, 64], sizes = [8, 32], strides = [1, 1]} : vector<8x128xf32> to vector<8x32xf32>
    %57 = vector.extract_strided_slice %52 {offsets = [0, 96], sizes = [8, 32], strides = [1, 1]} : vector<8x128xf32> to vector<8x32xf32>
    %58 = arith.mulf %55, %42 : vector<8x32xf32>
    %59 = arith.mulf %54, %56 : vector<8x32xf32>
    %60 = arith.addf %58, %59 : vector<8x32xf32>
    %61 = math.tanh %60 : vector<8x32xf32>
    %62 = arith.mulf %57, %61 : vector<8x32xf32>
    %cst_15 = arith.constant dense<0.000000e+00> : vector<8x128xf32>
    %63 = tpu.matmul %62, %6, %cst_15 {dimension_numbers = #tpu.dot_dimension_numbers<[1], [0], [0], [1], [0, 0, 1, 1], [], []>} : vector<8x32xf32>, vector<32x128xf32>, vector<8x128xf32> -> vector<8x128xf32>
    %64 = vector.extract_strided_slice %5 {offsets = [24, 0], sizes = [8, 128], strides = [1, 1]} : vector<64x128xf32> to vector<8x128xf32>
    %65 = arith.addf %63, %64 : vector<8x128xf32>
    %66 = arith.negf %65 : vector<8x128xf32>
    %67 = math.exp %66 : vector<8x128xf32>
    %cst_16 = arith.constant 1.000000e+00 : f32
    %68 = vector.broadcast %cst_16 : f32 to vector<8x128xf32>
    %69 = arith.addf %68, %67 : vector<8x128xf32>
    %70 = arith.divf %68, %69 : vector<8x128xf32>
    %71 = math.tanh %65 : vector<8x128xf32>
    %72 = vector.extract_strided_slice %70 {offsets = [0, 0], sizes = [8, 32], strides = [1, 1]} : vector<8x128xf32> to vector<8x32xf32>
    %73 = vector.extract_strided_slice %70 {offsets = [0, 32], sizes = [8, 32], strides = [1, 1]} : vector<8x128xf32> to vector<8x32xf32>
    %74 = vector.extract_strided_slice %71 {offsets = [0, 64], sizes = [8, 32], strides = [1, 1]} : vector<8x128xf32> to vector<8x32xf32>
    %75 = vector.extract_strided_slice %70 {offsets = [0, 96], sizes = [8, 32], strides = [1, 1]} : vector<8x128xf32> to vector<8x32xf32>
    %76 = arith.mulf %73, %60 : vector<8x32xf32>
    %77 = arith.mulf %72, %74 : vector<8x32xf32>
    %78 = arith.addf %76, %77 : vector<8x32xf32>
    %79 = math.tanh %78 : vector<8x32xf32>
    %80 = arith.mulf %75, %79 : vector<8x32xf32>
    %cst_17 = arith.constant dense<0.000000e+00> : vector<8x128xf32>
    %81 = tpu.matmul %80, %6, %cst_17 {dimension_numbers = #tpu.dot_dimension_numbers<[1], [0], [0], [1], [0, 0, 1, 1], [], []>} : vector<8x32xf32>, vector<32x128xf32>, vector<8x128xf32> -> vector<8x128xf32>
    %82 = vector.extract_strided_slice %5 {offsets = [32, 0], sizes = [8, 128], strides = [1, 1]} : vector<64x128xf32> to vector<8x128xf32>
    %83 = arith.addf %81, %82 : vector<8x128xf32>
    %84 = arith.negf %83 : vector<8x128xf32>
    %85 = math.exp %84 : vector<8x128xf32>
    %cst_18 = arith.constant 1.000000e+00 : f32
    %86 = vector.broadcast %cst_18 : f32 to vector<8x128xf32>
    %87 = arith.addf %86, %85 : vector<8x128xf32>
    %88 = arith.divf %86, %87 : vector<8x128xf32>
    %89 = math.tanh %83 : vector<8x128xf32>
    %90 = vector.extract_strided_slice %88 {offsets = [0, 0], sizes = [8, 32], strides = [1, 1]} : vector<8x128xf32> to vector<8x32xf32>
    %91 = vector.extract_strided_slice %88 {offsets = [0, 32], sizes = [8, 32], strides = [1, 1]} : vector<8x128xf32> to vector<8x32xf32>
    %92 = vector.extract_strided_slice %89 {offsets = [0, 64], sizes = [8, 32], strides = [1, 1]} : vector<8x128xf32> to vector<8x32xf32>
    %93 = vector.extract_strided_slice %88 {offsets = [0, 96], sizes = [8, 32], strides = [1, 1]} : vector<8x128xf32> to vector<8x32xf32>
    %94 = arith.mulf %91, %78 : vector<8x32xf32>
    %95 = arith.mulf %90, %92 : vector<8x32xf32>
    %96 = arith.addf %94, %95 : vector<8x32xf32>
    %97 = math.tanh %96 : vector<8x32xf32>
    %98 = arith.mulf %93, %97 : vector<8x32xf32>
    %cst_19 = arith.constant dense<0.000000e+00> : vector<8x128xf32>
    %99 = tpu.matmul %98, %6, %cst_19 {dimension_numbers = #tpu.dot_dimension_numbers<[1], [0], [0], [1], [0, 0, 1, 1], [], []>} : vector<8x32xf32>, vector<32x128xf32>, vector<8x128xf32> -> vector<8x128xf32>
    %100 = vector.extract_strided_slice %5 {offsets = [40, 0], sizes = [8, 128], strides = [1, 1]} : vector<64x128xf32> to vector<8x128xf32>
    %101 = arith.addf %99, %100 : vector<8x128xf32>
    %102 = arith.negf %101 : vector<8x128xf32>
    %103 = math.exp %102 : vector<8x128xf32>
    %cst_20 = arith.constant 1.000000e+00 : f32
    %104 = vector.broadcast %cst_20 : f32 to vector<8x128xf32>
    %105 = arith.addf %104, %103 : vector<8x128xf32>
    %106 = arith.divf %104, %105 : vector<8x128xf32>
    %107 = math.tanh %101 : vector<8x128xf32>
    %108 = vector.extract_strided_slice %106 {offsets = [0, 0], sizes = [8, 32], strides = [1, 1]} : vector<8x128xf32> to vector<8x32xf32>
    %109 = vector.extract_strided_slice %106 {offsets = [0, 32], sizes = [8, 32], strides = [1, 1]} : vector<8x128xf32> to vector<8x32xf32>
    %110 = vector.extract_strided_slice %107 {offsets = [0, 64], sizes = [8, 32], strides = [1, 1]} : vector<8x128xf32> to vector<8x32xf32>
    %111 = vector.extract_strided_slice %106 {offsets = [0, 96], sizes = [8, 32], strides = [1, 1]} : vector<8x128xf32> to vector<8x32xf32>
    %112 = arith.mulf %109, %96 : vector<8x32xf32>
    %113 = arith.mulf %108, %110 : vector<8x32xf32>
    %114 = arith.addf %112, %113 : vector<8x32xf32>
    %115 = math.tanh %114 : vector<8x32xf32>
    %116 = arith.mulf %111, %115 : vector<8x32xf32>
    %cst_21 = arith.constant dense<0.000000e+00> : vector<8x128xf32>
    %117 = tpu.matmul %116, %6, %cst_21 {dimension_numbers = #tpu.dot_dimension_numbers<[1], [0], [0], [1], [0, 0, 1, 1], [], []>} : vector<8x32xf32>, vector<32x128xf32>, vector<8x128xf32> -> vector<8x128xf32>
    %118 = vector.extract_strided_slice %5 {offsets = [48, 0], sizes = [8, 128], strides = [1, 1]} : vector<64x128xf32> to vector<8x128xf32>
    %119 = arith.addf %117, %118 : vector<8x128xf32>
    %120 = arith.negf %119 : vector<8x128xf32>
    %121 = math.exp %120 : vector<8x128xf32>
    %cst_22 = arith.constant 1.000000e+00 : f32
    %122 = vector.broadcast %cst_22 : f32 to vector<8x128xf32>
    %123 = arith.addf %122, %121 : vector<8x128xf32>
    %124 = arith.divf %122, %123 : vector<8x128xf32>
    %125 = math.tanh %119 : vector<8x128xf32>
    %126 = vector.extract_strided_slice %124 {offsets = [0, 0], sizes = [8, 32], strides = [1, 1]} : vector<8x128xf32> to vector<8x32xf32>
    %127 = vector.extract_strided_slice %124 {offsets = [0, 32], sizes = [8, 32], strides = [1, 1]} : vector<8x128xf32> to vector<8x32xf32>
    %128 = vector.extract_strided_slice %125 {offsets = [0, 64], sizes = [8, 32], strides = [1, 1]} : vector<8x128xf32> to vector<8x32xf32>
    %129 = vector.extract_strided_slice %124 {offsets = [0, 96], sizes = [8, 32], strides = [1, 1]} : vector<8x128xf32> to vector<8x32xf32>
    %130 = arith.mulf %127, %114 : vector<8x32xf32>
    %131 = arith.mulf %126, %128 : vector<8x32xf32>
    %132 = arith.addf %130, %131 : vector<8x32xf32>
    %133 = math.tanh %132 : vector<8x32xf32>
    %134 = arith.mulf %129, %133 : vector<8x32xf32>
    %cst_23 = arith.constant dense<0.000000e+00> : vector<8x128xf32>
    %135 = tpu.matmul %134, %6, %cst_23 {dimension_numbers = #tpu.dot_dimension_numbers<[1], [0], [0], [1], [0, 0, 1, 1], [], []>} : vector<8x32xf32>, vector<32x128xf32>, vector<8x128xf32> -> vector<8x128xf32>
    %136 = vector.extract_strided_slice %5 {offsets = [56, 0], sizes = [8, 128], strides = [1, 1]} : vector<64x128xf32> to vector<8x128xf32>
    %137 = arith.addf %135, %136 : vector<8x128xf32>
    %138 = arith.negf %137 : vector<8x128xf32>
    %139 = math.exp %138 : vector<8x128xf32>
    %cst_24 = arith.constant 1.000000e+00 : f32
    %140 = vector.broadcast %cst_24 : f32 to vector<8x128xf32>
    %141 = arith.addf %140, %139 : vector<8x128xf32>
    %142 = arith.divf %140, %141 : vector<8x128xf32>
    %143 = math.tanh %137 : vector<8x128xf32>
    %144 = vector.extract_strided_slice %142 {offsets = [0, 0], sizes = [8, 32], strides = [1, 1]} : vector<8x128xf32> to vector<8x32xf32>
    %145 = vector.extract_strided_slice %142 {offsets = [0, 32], sizes = [8, 32], strides = [1, 1]} : vector<8x128xf32> to vector<8x32xf32>
    %146 = vector.extract_strided_slice %143 {offsets = [0, 64], sizes = [8, 32], strides = [1, 1]} : vector<8x128xf32> to vector<8x32xf32>
    %147 = vector.extract_strided_slice %142 {offsets = [0, 96], sizes = [8, 32], strides = [1, 1]} : vector<8x128xf32> to vector<8x32xf32>
    %148 = arith.mulf %145, %132 : vector<8x32xf32>
    %149 = arith.mulf %144, %146 : vector<8x32xf32>
    %150 = arith.addf %148, %149 : vector<8x32xf32>
    %151 = math.tanh %150 : vector<8x32xf32>
    %152 = arith.mulf %147, %151 : vector<8x32xf32>
    %c0_25 = arith.constant 0 : index
    %c0_26 = arith.constant 0 : index
    %153 = vector.load %arg4[%c0_25, %c0_26] : memref<32x128xf32, #tpu.memory_space<vmem>>, vector<32x128xf32>
    %cst_27 = arith.constant dense<0.000000e+00> : vector<8x128xf32>
    %154 = tpu.matmul %152, %153, %cst_27 {dimension_numbers = #tpu.dot_dimension_numbers<[1], [0], [0], [1], [0, 0, 1, 1], [], []>} : vector<8x32xf32>, vector<32x128xf32>, vector<8x128xf32> -> vector<8x128xf32>
    %c0_28 = arith.constant 0 : index
    %c0_29 = arith.constant 0 : index
    %155 = vector.load %arg5[%c0_28, %c0_29] : memref<1x128xf32, #tpu.memory_space<vmem>>, vector<1x128xf32>
    %156 = vector.broadcast %155 : vector<1x128xf32> to vector<8x128xf32>
    %157 = arith.addf %154, %156 : vector<8x128xf32>
    %c0_30 = arith.constant 0 : index
    %c0_31 = arith.constant 0 : index
    %158 = vector.load %arg6[%c0_30, %c0_31] : memref<8x128xf32, #tpu.memory_space<vmem>>, vector<8x128xf32>
    tpu.vector_store %arg6[%c0_30, %c0_31], %157 {strides = array<i32>} : memref<8x128xf32, #tpu.memory_space<vmem>>, vector<8x128xf32>,
    return
  }
}

</mosaic_0001>

<bundles_post_ra>
// kernel: net_forward.1
= control target key start
LH: loop header
LB: loop body
LE: loop exit
PB: predicated region body
PF: predicated region fallthrough
CT: control target
= control target key end

     0   :  { %vm65_vm0 = vcmask 1040384   ;;  %vm40_vm1 = vcmask 72704   ;;  %v1387_v0 = vmov 0.0|0.0   ;;  %vm1388_vm2 = vmmov 1   ;;  %s1391_s13 = smov 64   ;;  %s1618_s1 = inlined_call_operand.vmem [shape: f32[9,128], index: 1, kind: input, shape index: {}]   ;;  %s1619_s2 = inlined_call_operand.vmem [shape: f32[32,128], index: 2, kind: input, shape index: {}]   ;;  %s1620_s0 = inlined_call_operand.vmem [shape: f32[64,9], index: 0, kind: input, shape index: {}]   ;;  %s1621_s3 = inlined_call_operand.vmem [shape: f32[1,128], index: 3, kind: input, shape index: {}]   ;;  %s1622_s4 = inlined_call_operand.vmem [shape: f32[32,128], index: 4, kind: input, shape index: {}]   ;;  %s1623_s5 = inlined_call_operand.vmem [shape: f32[1,128], index: 5, kind: input, shape index: {}]   ;;  %s1624_s6 = inlined_call_operand.vmem [shape: f32[8,128], index: 6, kind: output, shape index: {}]  }
   0x1   :  { %1263 = vmatprep.subr.bf16.mxu1 %v1387_v0  ;;  %v31_v1 = vld [vmem:[%s1618_s1] sm:$0xff]  ;;  %v32_v2 = vld [vmem:[%s1618_s1 + $0x8] sm:$0x1]  ;;  %vm1258_vm3 = vmpackc.low %vm65_vm0, %vm1388_vm2  ;;  %vm1389_vm4 = vmmov 0   ;;  %v1390_v7 = vmov 0.0   ;;  %vm178_vm5 = vcmask 261120  }
   0x2   :  { %v1257_v3 = vpack.c.bf16 %v32_v2, %v31_v1  ;;  %v174_v4 = vld [vmem:[%s1619_s2] sm:$0xff]  ;;  %v175_v5 = vld [vmem:[%s1619_s2 + $0x8] sm:$0xff]  ;;  %1166 = vmatprep.mubr.msk.f32.mxu1 %vm1389_vm4, %v1390_v7  ;;  %v176_v9 = vld [vmem:[%s1619_s2 + $0x10] sm:$0xff] }
   0x3   :  { %v23_v6 = vld [vmem:[%s1620_s0] sm:$0xff]  ;;  %v1446_v8 = vpack.c.bf16 %v175_v5, %v174_v4  ;;  %v177_v10 = vld [vmem:[%s1619_s2 + $0x18] sm:$0xff]  ;;  %v24_v11 = vld [vmem:[%s1620_s0 + $0x8] sm:$0xff] }
   0x4   :  { %1146 = vmatprep.mubr.msk.f32.mxu0 %vm40_vm1, %v23_v6  ;;  %1259 = vmatprep.subr.msk.bf16.mxu0 %vm1258_vm3, %v1257_v3  ;;  %v1459_v12 = vpack.c.bf16 %v177_v10, %v176_v9  ;;  %v1480_v13 = vld [vmem:[%s1621_s3] ss:$0 sm:$0xff]  ;;  %s1392_s3 = smov 32   ;;  %v25_v48 = vld [vmem:[%s1620_s0 + $0x10] sm:$0xff]  ;;  %v26_v49 = vld [vmem:[%s1620_s0 + $0x18] sm:$0xff] }
   0x5   :  { %1265 = vmatpush3.bf16.msra.mxu1 %v1446_v8  ;;  %1262 = vmatpush3.bf16.msk.msra.mxu0 %vm1258_vm3, %v1257_v3  ;;  %v27_v50 = vld [vmem:[%s1620_s0 + $0x20] sm:$0xff]  ;;  %v28_v51 = vld [vmem:[%s1620_s0 + $0x28] sm:$0xff]  ;;  %v29_v52 = vld [vmem:[%s1620_s0 + $0x30] sm:$0xff] }
   0x6   :  { %1266 = vmatprep.subr.bf16.mxu1 %v1387_v0  ;;  %1275 = vmatprep.subr.bf16.mxu0 %v1387_v0  ;;  %v30_v53 = vld [vmem:[%s1620_s0 + $0x38] sm:$0xff] }
   0x8   :  { %1147 = vmatmul.mubr.msk.f32.vlgmr.msra.gmra.mrb[0].mxu0 %vm40_vm1, %v24_v11 }
   0x9   :  { %1268 = vmatpush3.bf16.msra.mxu1 %v1459_v12  ;;  %1277 = vmatpush3.bf16.msra.mxu0 %v1446_v8 }
   0xa   :  { %1269 = vmatprep.subr.bf16.mxu1 %v1387_v0  ;;  %1278 = vmatprep.subr.bf16.mxu0 %v1387_v0 }
   0xb   :  { %1149 = vmatprep.mubr.msk.f32.mxu0 %vm40_vm1, %v25_v48 }
   0xc   :  { %1167 = vmatmul.mubr.f32.vlgmr.msra.gmra.mrb[0].mxu1 %v1390_v7  ;;  %1150 = vmatmul.mubr.msk.f32.gmra.mrb[2].mxu0 %vm40_vm1, %v26_v49 }
   0xd   :  { %1271 = vmatpush3.bf16.msra.mxu1 %v1446_v8  ;;  %1177 = vmatprep.mubr.msk.f32.mxu1 %vm1389_vm4, %v1390_v7 }
   0xe   :  { %1272 = vmatprep.subr.bf16.mxu1 %v1387_v0  ;;  %1280 = vmatpush3.bf16.msra.mxu0 %v1459_v12 }
   0xf   :  { %1287 = vmatprep.subr.bf16.mxu0 %v1387_v0  ;;  %1152 = vmatprep.mubr.msk.f32.mxu0 %vm40_vm1, %v27_v50 }
  0x10   :  { %1153 = vmatmul.mubr.msk.f32.gmra.mrb[4].mxu0 %vm40_vm1, %v28_v51 }
  0x11   :  { %1274 = vmatpush3.bf16.msra.mxu1 %v1459_v12  ;;  %1155 = vmatprep.mubr.msk.f32.mxu0 %vm40_vm1, %v29_v52 }
  0x12   :  { %1281 = vmatprep.subr.bf16.mxu1 %v1387_v0 }
  0x14   :  { %1156 = vmatmul.mubr.msk.f32.gmra.mrb[6].mxu0 %vm40_vm1, %v30_v53 }
  0x15   :  { %1188 = vmatprep.mubr.msk.f32.mxu0 %vm1389_vm4, %v1390_v7 }
  0xdb   :  { %v1148_v14 = vpop.f32.mrb[0].mxu0 }
  0xdc   :  { %v135_v15 = vpop.f32.mrb[1].mxu0  ;;  %v141_v34 = vadd.f32 %v1148_v14, %v1480_v13 }
  0xdd   :  { %v136_v16 = vadd.f32 %v1480_v13, %v135_v15 }
  0xdf   :  { %v248_v17 = vpop.f32.mrb[0].mxu1  ;;  %v1151_v57 = vpop.f32.mrb[2].mxu0 }
  0xe0   :  { %v249_v18 = vadd.f32 %v248_v17, %v136_v16  ;;  %v1168_v19 = vpop.f32.mrb[1].mxu1  ;;  %v145_v58 = vpop.f32.mrb[3].mxu0 }
  0xe1   :  { %v146_v1 = vadd.f32 %v1480_v13, %v145_v58 }
  0xe2   :  { %1323 = vtanh.f32 %v249_v18  ;;  %v1070_v21 = vmul.f32 -1.442695, %v249_v18 }
  0xe3   :  { %v1525_v59 = vpop.f32.mrb[4].mxu0 }
  0xe4   :  { %1325 = vpow2.f32 %v1070_v21  ;;  %v1527_v60 = vpop.f32.mrb[5].mxu0 }
  0xe7   :  { %v1529_v61 = vpop.f32.mrb[6].mxu0 }
  0xe8   :  { %v1531_v62 = vpop.f32.mrb[7].mxu0 }
  0xec   :  { %v1324_v20 = vpop.eup %1323 }
  0xed   :  { %261 = vrot.lane.b32.xlu0 %v1324_v20, %s1391_s13 }
  0xee   :  { %v1326_v22 = vpop.eup %1325 }
  0xef   :  { %v255_v23 = vadd.f32 1.0, %v1326_v22 }
  0xf1   :  { %1327 = vrcp.f32 %v255_v23  ;;  %v151_v23 = vadd.f32 %v1151_v57, %v1480_v13 }
  0xfb   :  { %v1328_v24 = vpop.eup %1327 }
  0xfc   :  { %v259_v27 = vmul.f32 0.0, %v1328_v24 }
 0x15f   :  { %v262_v25 = vpop.permute.xlu0 %261 }
 0x160   :  { %v264_v26 = vmul.f32 %v1328_v24, %v262_v25 }
 0x162   :  { %266 = vrot.lane.b32.xlu0 %v264_v26, %s1392_s3 }
 0x1d4   :  { %v267_v28 = vpop.permute.xlu0 %266 }
 0x1d5   :  { %v269_v29 = vadd.f32 %v267_v28, %v259_v27 }
 0x1d7   :  { %1329 = vtanh.f32 %v269_v29 }
 0x1e1   :  { %v1330_v30 = vpop.eup %1329 }
 0x1e2   :  { %272 = vrot.lane.b32.xlu1 %v1330_v30, %s1391_s13 }
 0x254   :  { %v273_v31 = vpop.permute.xlu1 %272 }
 0x255   :  { %v275_v32 = vmul.f32 %v1328_v24, %v273_v31 }
 0x257   :  { %277 = vrot.lane.b32.xlu1 %v275_v32, %s1392_s3 }
 0x2c9   :  { %v278_v33 = vpop.permute.xlu1 %277 }
 0x2ca   :  { %1178 = vmatmul.mubr.msk.f32.vlgmr.msra.gmra.mrb[2].mxu1 %vm178_vm5, %v278_v33 }
 0x2cb   :  { %1283 = vmatpush3.bf16.msra.mxu1 %v1446_v8  ;;  %1199 = vmatprep.mubr.msk.f32.mxu1 %vm1389_vm4, %v1390_v7 }
 0x2cc   :  { %1284 = vmatprep.subr.bf16.mxu1 %v1387_v0 }
 0x2cf   :  { %1286 = vmatpush3.bf16.msra.mxu1 %v1459_v12 }
 0x2d0   :  { %1293 = vmatprep.subr.bf16.mxu1 %v1387_v0 }
 0x39d   :  { %v347_v35 = vpop.f32.mrb[2].mxu1 }
 0x39e   :  { %v348_v36 = vadd.f32 %v347_v35, %v141_v34  ;;  %v1179_v37 = vpop.f32.mrb[3].mxu1 }
 0x3a0   :  { %1331 = vtanh.f32 %v348_v36  ;;  %v1072_v39 = vmul.f32 -1.442695, %v348_v36 }
 0x3a2   :  { %1333 = vpow2.f32 %v1072_v39 }
 0x3aa   :  { %v1332_v38 = vpop.eup %1331 }
 0x3ab   :  { %360 = vrot.lane.b32.xlu0 %v1332_v38, %s1391_s13 }
 0x3ac   :  { %v1334_v40 = vpop.eup %1333 }
 0x3ad   :  { %v354_v41 = vadd.f32 1.0, %v1334_v40 }
 0x3af   :  { %1335 = vrcp.f32 %v354_v41  ;;  %v156_v41 = vadd.f32 %v1480_v13, %v1527_v60  ;;  %v161_v60 = vadd.f32 %v1525_v59, %v1480_v13 }
 0x3b9   :  { %v1336_v42 = vpop.eup %1335 }
 0x3ba   :  { %v358_v45 = vmul.f32 %v1336_v42, %v269_v29 }
 0x41d   :  { %v361_v43 = vpop.permute.xlu0 %360 }
 0x41e   :  { %v363_v44 = vmul.f32 %v1336_v42, %v361_v43 }
 0x420   :  { %365 = vrot.lane.b32.xlu1 %v363_v44, %s1392_s3 }
 0x492   :  { %v366_v46 = vpop.permute.xlu1 %365 }
 0x493   :  { %v368_v47 = vadd.f32 %v366_v46, %v358_v45 }
 0x495   :  { %1337 = vtanh.f32 %v368_v47 }
 0x49f   :  { %v1338_v54 = vpop.eup %1337 }
 0x4a0   :  { %371 = vrot.lane.b32.xlu0 %v1338_v54, %s1391_s13 }
 0x512   :  { %v372_v55 = vpop.permute.xlu0 %371 }
 0x513   :  { %v374_v56 = vmul.f32 %v1336_v42, %v372_v55 }
 0x515   :  { %376 = vrot.lane.b32.xlu1 %v374_v56, %s1392_s3 }
 0x587   :  { %v377_v63 = vpop.permute.xlu1 %376 }
 0x588   :  { %1189 = vmatmul.mubr.msk.f32.vlgmr.msra.gmra.mrb[8].mxu0 %vm178_vm5, %v377_v63 }
 0x589   :  { %1289 = vmatpush3.bf16.msra.mxu0 %v1446_v8  ;;  %1210 = vmatprep.mubr.msk.f32.mxu0 %vm1389_vm4, %v1390_v7 }
 0x58a   :  { %1290 = vmatprep.subr.bf16.mxu0 %v1387_v0 }
 0x58d   :  { %1292 = vmatpush3.bf16.msra.mxu0 %v1459_v12 }
 0x58e   :  { %1299 = vmatprep.subr.bf16.mxu0 %v1387_v0 }
 0x65b   :  { %v446_v2 = vpop.f32.mrb[8].mxu0 }
 0x65c   :  { %v447_v3 = vadd.f32 %v446_v2, %v146_v1  ;;  %v1190_v4 = vpop.f32.mrb[9].mxu0 }
 0x65e   :  { %1339 = vtanh.f32 %v447_v3  ;;  %v1074_v6 = vmul.f32 -1.442695, %v447_v3 }
 0x660   :  { %1341 = vpow2.f32 %v1074_v6 }
 0x668   :  { %v1340_v5 = vpop.eup %1339 }
 0x669   :  { %459 = vrot.lane.b32.xlu0 %v1340_v5, %s1391_s13 }
 0x66a   :  { %v1342_v9 = vpop.eup %1341 }
 0x66b   :  { %v453_v10 = vadd.f32 1.0, %v1342_v9 }
 0x66d   :  { %1343 = vrcp.f32 %v453_v10 }
 0x677   :  { %v1344_v11 = vpop.eup %1343 }
 0x678   :  { %v457_v16 = vmul.f32 %v1344_v11, %v368_v47 }
 0x6db   :  { %v460_v14 = vpop.permute.xlu0 %459 }
 0x6dc   :  { %v462_v15 = vmul.f32 %v1344_v11, %v460_v14 }
 0x6de   :  { %464 = vrot.lane.b32.xlu1 %v462_v15, %s1392_s3 }
 0x750   :  { %v465_v17 = vpop.permute.xlu1 %464 }
 0x751   :  { %v467_v18 = vadd.f32 %v465_v17, %v457_v16 }
 0x753   :  { %1345 = vtanh.f32 %v467_v18 }
 0x75d   :  { %v1346_v19 = vpop.eup %1345 }
 0x75e   :  { %470 = vrot.lane.b32.xlu0 %v1346_v19, %s1391_s13 }
 0x7d0   :  { %v471_v20 = vpop.permute.xlu0 %470 }
 0x7d1   :  { %v473_v21 = vmul.f32 %v1344_v11, %v471_v20 }
 0x7d3   :  { %475 = vrot.lane.b32.xlu1 %v473_v21, %s1392_s3 }
 0x845   :  { %v476_v22 = vpop.permute.xlu1 %475 }
 0x846   :  { %1200 = vmatmul.mubr.msk.f32.vlgmr.msra.gmra.mrb[4].mxu1 %vm178_vm5, %v476_v22 }
 0x847   :  { %1295 = vmatpush3.bf16.msra.mxu1 %v1446_v8  ;;  %1221 = vmatprep.mubr.msk.f32.mxu1 %vm1389_vm4, %v1390_v7 }
 0x848   :  { %1296 = vmatprep.subr.bf16.mxu1 %v1387_v0 }
 0x84b   :  { %1298 = vmatpush3.bf16.msra.mxu1 %v1459_v12 }
 0x84c   :  { %1305 = vmatprep.subr.bf16.mxu1 %v1387_v0 }
 0x919   :  { %v545_v24 = vpop.f32.mrb[4].mxu1 }
 0x91a   :  { %v546_v25 = vadd.f32 %v545_v24, %v151_v23  ;;  %v1201_v26 = vpop.f32.mrb[5].mxu1 }
 0x91c   :  { %1347 = vtanh.f32 %v546_v25  ;;  %v1076_v28 = vmul.f32 -1.442695, %v546_v25 }
 0x91e   :  { %1349 = vpow2.f32 %v1076_v28 }
 0x926   :  { %v1348_v27 = vpop.eup %1347 }
 0x927   :  { %558 = vrot.lane.b32.xlu0 %v1348_v27, %s1391_s13 }
 0x928   :  { %v1350_v29 = vpop.eup %1349 }
 0x929   :  { %v552_v30 = vadd.f32 1.0, %v1350_v29 }
 0x92b   :  { %1351 = vrcp.f32 %v552_v30 }
 0x935   :  { %v1352_v31 = vpop.eup %1351 }
 0x936   :  { %v556_v34 = vmul.f32 %v1352_v31, %v467_v18  ;;  %v166_v18 = vadd.f32 %v1480_v13, %v1531_v62 }
 0x999   :  { %v559_v32 = vpop.permute.xlu0 %558 }
 0x99a   :  { %v561_v33 = vmul.f32 %v1352_v31, %v559_v32 }
 0x99c   :  { %563 = vrot.lane.b32.xlu1 %v561_v33, %s1392_s3 }
 0xa0e   :  { %v564_v35 = vpop.permute.xlu1 %563 }
 0xa0f   :  { %v566_v36 = vadd.f32 %v564_v35, %v556_v34  ;;  %v171_v34 = vadd.f32 %v1529_v61, %v1480_v13  ;;  %v969_v61 = vld [vmem:[%s1622_s4] sm:$0xff] }
 0xa11   :  { %1353 = vtanh.f32 %v566_v36 }
 0xa1b   :  { %v1354_v37 = vpop.eup %1353 }
 0xa1c   :  { %569 = vrot.lane.b32.xlu0 %v1354_v37, %s1391_s13 }
 0xa8e   :  { %v570_v38 = vpop.permute.xlu0 %569 }
 0xa8f   :  { %v572_v39 = vmul.f32 %v1352_v31, %v570_v38 }
 0xa91   :  { %574 = vrot.lane.b32.xlu1 %v572_v39, %s1392_s3 }
 0xb03   :  { %v575_v40 = vpop.permute.xlu1 %574 }
 0xb04   :  { %1211 = vmatmul.mubr.msk.f32.vlgmr.msra.gmra.mrb[10].mxu0 %vm178_vm5, %v575_v40 }
 0xb05   :  { %1301 = vmatpush3.bf16.msra.mxu0 %v1446_v8  ;;  %1232 = vmatprep.mubr.msk.f32.mxu0 %vm1389_vm4, %v1390_v7 }
 0xb06   :  { %1302 = vmatprep.subr.bf16.mxu0 %v1387_v0 }
 0xb09   :  { %1304 = vmatpush3.bf16.msra.mxu0 %v1459_v12 }
 0xb0a   :  { %1311 = vmatprep.subr.bf16.mxu0 %v1387_v0 }
 0xbd7   :  { %v644_v42 = vpop.f32.mrb[10].mxu0 }
 0xbd8   :  { %v645_v43 = vadd.f32 %v644_v42, %v156_v41  ;;  %v1212_v44 = vpop.f32.mrb[11].mxu0 }
 0xbda   :  { %1355 = vtanh.f32 %v645_v43  ;;  %v1078_v46 = vmul.f32 -1.442695, %v645_v43 }
 0xbdc   :  { %1357 = vpow2.f32 %v1078_v46 }
 0xbe4   :  { %v1356_v45 = vpop.eup %1355 }
 0xbe5   :  { %657 = vrot.lane.b32.xlu0 %v1356_v45, %s1391_s13 }
 0xbe6   :  { %v1358_v47 = vpop.eup %1357 }
 0xbe7   :  { %v651_v48 = vadd.f32 1.0, %v1358_v47  ;;  %v970_v47 = vld [vmem:[%s1622_s4 + $0x8] sm:$0xff] }
 0xbe9   :  { %1359 = vrcp.f32 %v651_v48  ;;  %v971_v48 = vld [vmem:[%s1622_s4 + $0x10] sm:$0xff] }
 0xbf3   :  { %v1360_v49 = vpop.eup %1359 }
 0xbf4   :  { %v655_v52 = vmul.f32 %v1360_v49, %v566_v36 }
 0xc57   :  { %v658_v50 = vpop.permute.xlu0 %657 }
 0xc58   :  { %v660_v51 = vmul.f32 %v1360_v49, %v658_v50  ;;  %v972_v50 = vld [vmem:[%s1622_s4 + $0x18] sm:$0xff] }
 0xc5a   :  { %662 = vrot.lane.b32.xlu1 %v660_v51, %s1392_s3  ;;  %v1315_v51 = vpack.c.bf16 %v972_v50, %v971_v48 }
 0xccc   :  { %v663_v53 = vpop.permute.xlu1 %662 }
 0xccd   :  { %v665_v54 = vadd.f32 %v663_v53, %v655_v52 }
 0xccf   :  { %1361 = vtanh.f32 %v665_v54 }
 0xcd9   :  { %v1362_v55 = vpop.eup %1361 }
 0xcda   :  { %668 = vrot.lane.b32.xlu0 %v1362_v55, %s1391_s13 }
 0xd4c   :  { %v669_v56 = vpop.permute.xlu0 %668 }
 0xd4d   :  { %v671_v57 = vmul.f32 %v1360_v49, %v669_v56  ;;  %v1312_v49 = vpack.c.bf16 %v970_v47, %v969_v61  ;;  %v1085_v56 = vld [vmem:[%s1623_s5] ss:$0 sm:$0xff] }
 0xd4f   :  { %673 = vrot.lane.b32.xlu1 %v671_v57, %s1392_s3 }
 0xdc1   :  { %v674_v58 = vpop.permute.xlu1 %673 }
 0xdc2   :  { %1222 = vmatmul.mubr.msk.f32.vlgmr.msra.gmra.mrb[6].mxu1 %vm178_vm5, %v674_v58 }
 0xdc3   :  { %1307 = vmatpush3.bf16.msra.mxu1 %v1446_v8  ;;  %1243 = vmatprep.mubr.msk.f32.mxu1 %vm1389_vm4, %v1390_v7 }
 0xdc4   :  { %1308 = vmatprep.subr.bf16.mxu1 %v1387_v0 }
 0xdc7   :  { %1310 = vmatpush3.bf16.msra.mxu1 %v1459_v12 }
 0xe95   :  { %v743_v63 = vpop.f32.mrb[6].mxu1 }
 0xe96   :  { %v744_v1 = vadd.f32 %v743_v63, %v161_v60  ;;  %v1223_v2 = vpop.f32.mrb[7].mxu1 }
 0xe98   :  { %1363 = vtanh.f32 %v744_v1  ;;  %v1080_v4 = vmul.f32 -1.442695, %v744_v1 }
 0xe9a   :  { %1365 = vpow2.f32 %v1080_v4 }
 0xea2   :  { %v1364_v3 = vpop.eup %1363 }
 0xea3   :  { %756 = vrot.lane.b32.xlu0 %v1364_v3, %s1391_s13 }
 0xea4   :  { %v1366_v8 = vpop.eup %1365 }
 0xea5   :  { %v750_v5 = vadd.f32 1.0, %v1366_v8 }
 0xea7   :  { %1367 = vrcp.f32 %v750_v5 }
 0xeb1   :  { %v1368_v6 = vpop.eup %1367 }
 0xeb2   :  { %v754_v12 = vmul.f32 %v1368_v6, %v665_v54 }
 0xf15   :  { %v757_v9 = vpop.permute.xlu0 %756 }
 0xf16   :  { %v759_v10 = vmul.f32 %v1368_v6, %v757_v9 }
 0xf18   :  { %761 = vrot.lane.b32.xlu1 %v759_v10, %s1392_s3 }
 0xf8a   :  { %v762_v11 = vpop.permute.xlu1 %761 }
 0xf8b   :  { %v764_v59 = vadd.f32 %v762_v11, %v754_v12 }
 0xf8d   :  { %1369 = vtanh.f32 %v764_v59 }
 0xf97   :  { %v1370_v14 = vpop.eup %1369 }
 0xf98   :  { %767 = vrot.lane.b32.xlu0 %v1370_v14, %s1391_s13 }
0x100a   :  { %v768_v15 = vpop.permute.xlu0 %767 }
0x100b   :  { %v770_v16 = vmul.f32 %v1368_v6, %v768_v15 }
0x100d   :  { %772 = vrot.lane.b32.xlu1 %v770_v16, %s1392_s3 }
0x107f   :  { %v773_v17 = vpop.permute.xlu1 %772 }
0x1080   :  { %1233 = vmatmul.mubr.msk.f32.vlgmr.msra.gmra.mrb[12].mxu0 %vm178_vm5, %v773_v17 }
0x1081   :  { %1254 = vmatprep.mubr.msk.f32.mxu0 %vm1389_vm4, %v1390_v7  ;;  %1313 = vmatpush3.bf16.msra.mxu0 %v1312_v49 }
0x1082   :  { %1314 = vmatprep.subr.bf16.mxu0 %v1387_v0 }
0x1085   :  { %1316 = vmatpush3.bf16.msra.mxu0 %v1315_v51 }
0x1153   :  { %v842_v19 = vpop.f32.mrb[12].mxu0 }
0x1154   :  { %v843_v20 = vadd.f32 %v842_v19, %v166_v18  ;;  %v1234_v21 = vpop.f32.mrb[13].mxu0 }
0x1156   :  { %1371 = vtanh.f32 %v843_v20  ;;  %v1082_v23 = vmul.f32 -1.442695, %v843_v20 }
0x1158   :  { %1373 = vpow2.f32 %v1082_v23 }
0x1160   :  { %v1372_v22 = vpop.eup %1371 }
0x1161   :  { %855 = vrot.lane.b32.xlu0 %v1372_v22, %s1391_s13 }
0x1162   :  { %v1374_v24 = vpop.eup %1373 }
0x1163   :  { %v849_v25 = vadd.f32 1.0, %v1374_v24 }
0x1165   :  { %1375 = vrcp.f32 %v849_v25 }
0x116f   :  { %v1376_v26 = vpop.eup %1375 }
0x1170   :  { %v853_v7 = vmul.f32 %v1376_v26, %v764_v59 }
0x11d3   :  { %v856_v27 = vpop.permute.xlu0 %855 }
0x11d4   :  { %v858_v28 = vmul.f32 %v1376_v26, %v856_v27 }
0x11d6   :  { %860 = vrot.lane.b32.xlu1 %v858_v28, %s1392_s3 }
0x1248   :  { %v861_v29 = vpop.permute.xlu1 %860 }
0x1249   :  { %v863_v62 = vadd.f32 %v861_v29, %v853_v7 }
0x124b   :  { %1377 = vtanh.f32 %v863_v62 }
0x1255   :  { %v1378_v30 = vpop.eup %1377 }
0x1256   :  { %866 = vrot.lane.b32.xlu0 %v1378_v30, %s1391_s13 }
0x12c8   :  { %v867_v31 = vpop.permute.xlu0 %866 }
0x12c9   :  { %v869_v32 = vmul.f32 %v1376_v26, %v867_v31 }
0x12cb   :  { %871 = vrot.lane.b32.xlu1 %v869_v32, %s1392_s3 }
0x133d   :  { %v872_v33 = vpop.permute.xlu1 %871 }
0x133e   :  { %1244 = vmatmul.mubr.msk.f32.vlgmr.msra.gmra.mrb[8].mxu1 %vm178_vm5, %v872_v33 }
0x1411   :  { %v941_v35 = vpop.f32.mrb[8].mxu1 }
0x1412   :  { %v942_v36 = vadd.f32 %v941_v35, %v171_v34  ;;  %v1245_v37 = vpop.f32.mrb[9].mxu1 }
0x1414   :  { %1379 = vtanh.f32 %v942_v36  ;;  %v1084_v39 = vmul.f32 -1.442695, %v942_v36 }
0x1416   :  { %1381 = vpow2.f32 %v1084_v39 }
0x141e   :  { %v1380_v38 = vpop.eup %1379 }
0x141f   :  { %954 = vrot.lane.b32.xlu0 %v1380_v38, %s1391_s13 }
0x1420   :  { %v1382_v40 = vpop.eup %1381 }
0x1421   :  { %v948_v41 = vadd.f32 1.0, %v1382_v40 }
0x1423   :  { %1383 = vrcp.f32 %v948_v41 }
0x142d   :  { %v1384_v42 = vpop.eup %1383 }
0x142e   :  { %v952_v45 = vmul.f32 %v1384_v42, %v863_v62 }
0x1491   :  { %v955_v43 = vpop.permute.xlu0 %954 }
0x1492   :  { %v957_v44 = vmul.f32 %v1384_v42, %v955_v43 }
0x1494   :  { %959 = vrot.lane.b32.xlu1 %v957_v44, %s1392_s3 }
0x1506   :  { %v960_v46 = vpop.permute.xlu1 %959 }
0x1507   :  { %v962_v13 = vadd.f32 %v960_v46, %v952_v45 }
0x1509   :  { %1385 = vtanh.f32 %v962_v13 }
0x1513   :  { %v1386_v52 = vpop.eup %1385 }
0x1514   :  { %965 = vrot.lane.b32.xlu0 %v1386_v52, %s1391_s13 }
0x1586   :  { %v966_v53 = vpop.permute.xlu0 %965 }
0x1587   :  { %v968_v54 = vmul.f32 %v1384_v42, %v966_v53 }
0x1589   :  { %981 = vrot.lane.b32.xlu1 %v968_v54, %s1392_s3 }
0x15fb   :  { %v982_v55 = vpop.permute.xlu1 %981 }
0x15fc   :  { %1255 = vmatmul.mubr.msk.f32.vlgmr.msra.gmra.mrb[14].mxu0 %vm178_vm5, %v982_v55 }
0x16cf   :  { %v1051_v57 = vpop.f32.mrb[14].mxu0 }
0x16d0   :  { %v1052_v58 = vadd.f32 %v1085_v56, %v1051_v57  ;;  %v1256_v60 = vpop.f32.mrb[15].mxu0 }
0x16d2   :  { %1055 = vst [vmem:[%s1624_s6] sm:$0xff] %v1052_v58 }

</bundles_post_ra>
